<compile_context>
chip_gen: v7x
topology: tpu7x:2x2x1
jax: 0.10.0
libtpu: 0.0.40
codegen_flags: <defaults>
</compile_context>

<pallas_src>
import jax
import jax.numpy as jnp
import numpy as np
from jax.experimental import pallas as pl
from jax.experimental.pallas import tpu as pltpu


# ----------------------------------------------------------------------------
# Kernel factory
# ----------------------------------------------------------------------------
def _make_kernel(tk, feat_resident, use_scratch):
    """Builds the kernel body.

    Grid: (batch, E_out tiles, E_in tiles); the reduction axis (E_in) is last.
      feat_ref : (Cp, Ein_p) bf16 if feat_resident else (Cp, TK) bf16
      grp_ref  : (TK, TN)    int8 (0/1)
      inv_ref  : (1, TN)     f32  (exact 1/occurrences)
      out_ref  : (Cp, TN)    out dtype
      acc_ref  : (Cp, TN)    f32  (only when use_scratch)
    """

    def body(feat_ref, grp_ref, inv_ref, out_ref, acc_ref):
        k = pl.program_id(2)

        if feat_resident:
            start = pl.multiple_of(k * tk, 128)
            feat = feat_ref[:, pl.ds(start, tk)]          # (Cp, TK) bf16
        else:
            feat = feat_ref[...]                          # (Cp, TK) bf16

        # int8 -> bf16 cast (VPU filler on a mem-bound kernel); bf16 x bf16 MXU
        # with f32 accumulation. Groups are exact 0/1 in any float dtype.
        part = jnp.dot(feat, grp_ref[...].astype(jnp.bfloat16),
                       preferred_element_type=jnp.float32)

        @pl.when(k == 0)
        def _first():
            acc_ref[...] = part                           # no zero-init + add

        @pl.when(k != 0)
        def _accum():
            acc_ref[...] = acc_ref[...] + part

        @pl.when(k == pl.num_programs(2) - 1)
        def _finalize():
            # Post-matmul column scaling by exact 1/occurrences.
            out_ref[...] = (acc_ref[...] * inv_ref[...]).astype(out_ref.dtype)

    if use_scratch:
        return body

    # f32 output: the output block doubles as the accumulator (its block index
    # does not depend on k, so it stays resident in VMEM across the reduction).
    def body_noscratch(feat_ref, grp_ref, inv_ref, out_ref):
        return body(feat_ref, grp_ref, inv_ref, out_ref, out_ref)

    return body_noscratch


# ----------------------------------------------------------------------------
# Wrapper helpers
# ----------------------------------------------------------------------------
def _round_up(x, m):
    return ((x + m - 1) // m) * m


def _tile_candidates(dim, max_tile):
    """dim is a multiple of 128; multiples of 128 dividing dim, <= max_tile,
    descending."""
    cands = [t for t in range(128, dim + 1, 128) if dim % t == 0 and t <= max_tile]
    if not cands:
        cands = [128]
    return sorted(cands, reverse=True)


def _vmem_bytes(cp, ein_p, tk, tn, feat_resident, use_scratch):
    """Rough per-step VMEM footprint (double-buffered pipeline blocks)."""
    feat = 2 * cp * (ein_p if feat_resident else tk) * 2     # bf16
    grp = 2 * tk * tn * 1                                    # int8
    inv = 2 * 1 * tn * 4                                     # f32
    out = 2 * cp * tn * 4                                    # f32-ish block
    tmp = tk * tn * 2                                        # bf16 cast temporary
    scr = cp * tn * 4 if use_scratch else 0
    return feat + grp + inv + out + tmp + scr


# ----------------------------------------------------------------------------
# Wrapper
# ----------------------------------------------------------------------------
def mesh_unpool(features, groups, occurrences, *, max_tile=2048,
                vmem_budget_bytes=40 << 20):
    """features: (B, C, E_in); groups: (B, E_in, E_out) 0/1 (zero-padded);
    occurrences: (B, E_out) (one-padded, >= 1).  Returns (B, C, E_out)."""
    B, C, E_in = features.shape
    _, _, E_out = groups.shape

    # TPU-alignment padding (semantically neutral: zero rows/cols of `groups`
    # contribute nothing; padded occurrences are 1.0 so 1/occ is well defined).
    Cp = _round_up(C, 8)
    Ein_p = _round_up(E_in, 128)
    Eout_p = _round_up(E_out, 128)

    # TODO(synk): in production, produce / cache the padded int8 `groups` (and
    # the reciprocal occurrences) upstream so this pad + cast copy of the
    # dominant (B, E_in, E_out) array is not paid on every forward call.
    feat_p = jnp.pad(features, ((0, 0), (0, Cp - C), (0, Ein_p - E_in))
                     ).astype(jnp.bfloat16)                  # tiny operand
    grp_p = jnp.pad(groups, ((0, 0), (0, Ein_p - E_in), (0, Eout_p - E_out))
                    ).astype(jnp.int8)                       # 0/1 -> exact int8
    occ_p = jnp.pad(occurrences.astype(jnp.float32),
                    ((0, 0), (0, Eout_p - E_out)), constant_values=1.0)
    inv_occ = (1.0 / occ_p).reshape(B, 1, Eout_p)            # exact division (tiny)

    out_dtype = features.dtype
    use_scratch = np.dtype(out_dtype) != np.dtype(np.float32)
    # Keep the whole bf16 features slab resident if it is a small fraction of
    # the VMEM budget; otherwise fall back to streaming feature tiles.
    feat_resident = (2 * Cp * Ein_p * 2) <= (vmem_budget_bytes // 4)

    # Tile selection: largest lane-dense output tile first, then the largest
    # reduction tile that fits the VMEM budget.
    tn_cands = _tile_candidates(Eout_p, max_tile)
    tk_cands = _tile_candidates(Ein_p, max_tile)
    TK = TN = None
    for tn in tn_cands:
        for tk in tk_cands:
            if _vmem_bytes(Cp, Ein_p, tk, tn, feat_resident,
                           use_scratch) <= vmem_budget_bytes:
                TK, TN = tk, tn
                break
        if TK is not None:
            break
    if TK is None:
        TK, TN = tk_cands[-1], tn_cands[-1]

    # v7x megacore sanity: keep the parallel extent >= 2 when B == 1.
    if B == 1 and Eout_p // TN < 2:
        smaller = [t for t in tn_cands if Eout_p // t >= 2]
        if smaller:
            TN = smaller[0]

    grid = (B, Eout_p // TN, Ein_p // TK)

    out_itemsize = np.dtype(out_dtype).itemsize
    cost = pl.CostEstimate(
        flops=2 * B * Cp * Ein_p * Eout_p,
        transcendentals=0,
        bytes_accessed=int(B * Cp * Ein_p * 2          # features (bf16, once)
                           + B * Ein_p * Eout_p * 1    # groups (int8, once)
                           + B * Eout_p * 4            # 1/occurrences
                           + B * Cp * Eout_p * out_itemsize),
    )

    vmem_need = _vmem_bytes(Cp, Ein_p, TK, TN, feat_resident, use_scratch)
    vmem_limit = int(min(max(vmem_need * 3 // 2 + (2 << 20), 8 << 20), 60 << 20))

    feat_spec = (pl.BlockSpec((None, Cp, Ein_p), lambda b, n, k: (b, 0, 0))
                 if feat_resident else
                 pl.BlockSpec((None, Cp, TK), lambda b, n, k: (b, 0, k)))

    out_p = pl.pallas_call(
        _make_kernel(TK, feat_resident, use_scratch),
        out_shape=jax.ShapeDtypeStruct((B, Cp, Eout_p), out_dtype),
        grid_spec=pltpu.PrefetchScalarGridSpec(
            num_scalar_prefetch=0,
            grid=grid,
            in_specs=[
                feat_spec,                                                 # features
                pl.BlockSpec((None, TK, TN), lambda b, n, k: (b, k, n)),   # groups
                pl.BlockSpec((None, 1, TN), lambda b, n, k: (b, 0, n)),    # 1/occ
            ],
            out_specs=pl.BlockSpec((None, Cp, TN), lambda b, n, k: (b, 0, n)),
            scratch_shapes=([pltpu.VMEM((Cp, TN), jnp.float32)]
                            if use_scratch else []),
        ),
        compiler_params=pltpu.CompilerParams(
            dimension_semantics=("parallel", "parallel", "arbitrary"),
            vmem_limit_bytes=vmem_limit,
        ),
        cost_estimate=cost,
    )(feat_p, grp_p, inv_occ)

    return out_p[:, :C, :E_out]


# ----------------------------------------------------------------------------
# Glue mirroring zero_pad_groups / __one_pad_occurrences (plain JAX).
# ----------------------------------------------------------------------------
def zero_pad_groups(groups_raw, e_in_target, e_out_target):
    r, c = groups_raw.shape
    return jnp.pad(groups_raw, ((0, e_in_target - r), (0, e_out_target - c)),
                   constant_values=0.0)


def one_pad_occurrences(occ_raw, e_out_target):
    n = occ_raw.shape[0]
    return jnp.pad(occ_raw, (0, e_out_target - n), constant_values=1.0)


if __name__ == "__main__":
    key = jax.random.PRNGKey(0)
    k_feat, k_grp, k_occ = jax.random.split(key, 3)

    # Small shapes consistent with the module's forward (exercise padding + tiling).
    B, C = 2, 8
    E_in = 200                      # half-edges before unpooling
    unroll_target = 150             # half-edge target after unpooling (E_out)
    E_in_raw, E_out_raw = 180, 140  # per-mesh raw history sizes

    # Deterministic synthetic "mesh history": 0/1 group memberships + counts >= 1.
    features = jax.random.normal(k_feat, (B, C, E_in), dtype=jnp.float32)
    groups_raw = (jax.random.uniform(k_grp, (B, E_in_raw, E_out_raw)) > 0.5
                  ).astype(jnp.float32)
    occ_raw = jax.random.randint(k_occ, (B, E_out_raw), 1, 4).astype(jnp.float32)

    groups = jnp.stack([zero_pad_groups(groups_raw[b], E_in, unroll_target)
                        for b in range(B)], axis=0)          # (B, E_in, E_out)
    occurrences = jnp.stack([one_pad_occurrences(occ_raw[b], unroll_target)
                             for b in range(B)], axis=0)     # (B, E_out)
    # TODO(synk): mesh.go_back_one_step_in_history() mutates Python-side mesh
    # objects and has no array-level equivalent; intentionally omitted.

    # Float64 references of the PyTorch forward (numpy, host side).
    feat64 = np.asarray(features, dtype=np.float64)
    grp64 = np.asarray(groups, dtype=np.float64)
    occ64 = np.asarray(occurrences, dtype=np.float64)
    unpool_ref = grp64 / occ64[:, None, :]
    ref = np.einsum("bce,beo->bco", feat64, unpool_ref)
    # Reference with features pre-rounded to bf16 (the kernel's precision
    # regime: bf16 inputs, f32 accumulation, exact 1/occ).
    feat_bf = np.asarray(features.astype(jnp.bfloat16).astype(jnp.float32),
                         dtype=np.float64)
    ref_bf = np.einsum("bce,beo->bco", feat_bf, unpool_ref)

    # 1) Default (large-tile) path: single E_in / E_out tile after padding.
    out_big = mesh_unpool(features, groups, occurrences)
    # 2) Small tiles to exercise the multi-tile reduction, the output-resident
    #    accumulator, and the in-kernel pl.ds slicing of the resident features.
    out_small = mesh_unpool(features, groups, occurrences, max_tile=128)
    jax.block_until_ready((out_big, out_small))

    for out in (out_big, out_small):
        assert out.shape == (B, C, unroll_target)
        out64 = np.asarray(out, dtype=np.float64)
        # Tight check against the bf16-input reference (kernel numerics).
        assert np.allclose(out64, ref_bf, rtol=1e-3, atol=1e-3), \
            "mismatch vs bf16-precision reference"
        # Loose check against the exact f32/f64 PyTorch semantics; slack covers
        # the bf16 rounding of features (flagged precision change, f32 accum).
        assert np.allclose(out64, ref, rtol=2e-2, atol=1e-1), \
            "mismatch vs exact reference"
    print("KERNEL_OK")
</pallas_src>

<mosaic_0001>
module attributes {stable_mosaic.version = 11 : i64} {
  func.func @body_noscratch(%arg0: i32, %arg1: i32, %arg2: i32, %arg3: memref<1x8x256xbf16, #tpu.memory_space<vmem>>, %arg4: memref<1x256x256xi8, #tpu.memory_space<vmem>>, %arg5: memref<1x1x256xf32, #tpu.memory_space<vmem>>, %arg6: memref<1x8x256xf32, #tpu.memory_space<vmem>>) attributes {dimension_semantics = [#tpu.dimension_semantics<parallel>, #tpu.dimension_semantics<parallel>, #tpu.dimension_semantics<arbitrary>], iteration_bounds = array<i64: 2, 1, 1>, scalar_prefetch = 0 : i64, scratch_operands = 0 : i64, tpu.core_type = #tpu.core_type<tc>, window_params = [{transform_indices = @transform_0, window_bounds = array<i64: 1, 8, 256>}, {transform_indices = @transform_1, window_bounds = array<i64: 1, 256, 256>}, {transform_indices = @transform_2, window_bounds = array<i64: 1, 1, 256>}, {transform_indices = @transform_3, window_bounds = array<i64: 1, 8, 256>}]} {
    %c256_i32 = arith.constant 256 : i32
    %0 = arith.muli %arg2, %c256_i32 : i32
    %1 = tpu.assume_multiple %0, 128 : i32
    %c0 = arith.constant 0 : index
    %c0_0 = arith.constant 0 : index
    %2 = arith.index_cast %1 : i32 to index
    %3 = vector.load %arg3[%c0, %c0_0, %2] : memref<1x8x256xbf16, #tpu.memory_space<vmem>>, vector<1x8x256xbf16>
    %4 = vector.shape_cast %3 : vector<1x8x256xbf16> to vector<8x256xbf16>
    %c0_1 = arith.constant 0 : index
    %c0_2 = arith.constant 0 : index
    %c0_3 = arith.constant 0 : index
    %5 = vector.load %arg4[%c0_1, %c0_2, %c0_3] : memref<1x256x256xi8, #tpu.memory_space<vmem>>, vector<1x256x256xi8>
    %6 = vector.shape_cast %5 : vector<1x256x256xi8> to vector<256x256xi8>
    %7 = arith.sitofp %6 : vector<256x256xi8> to vector<256x256xbf16>
    %cst = arith.constant dense<0.000000e+00> : vector<8x256xf32>
    %8 = tpu.matmul %4, %7, %cst {dimension_numbers = #tpu.dot_dimension_numbers<[1], [0], [0], [1], [0, 0, 1, 1], [], []>} : vector<8x256xbf16>, vector<256x256xbf16>, vector<8x256xf32> -> vector<8x256xf32>
    %c0_i32 = arith.constant 0 : i32
    %9 = arith.cmpi eq, %arg2, %c0_i32 : i32
    %10 = arith.extui %9 : i1 to i32
    %c0_i32_4 = arith.constant 0 : i32
    %11 = arith.cmpi ne, %10, %c0_i32_4 : i32
    scf.if %11 {
      %c0_9 = arith.constant 0 : index
      %c0_10 = arith.constant 0 : index
      %c0_11 = arith.constant 0 : index
      %18 = vector.load %arg6[%c0_9, %c0_10, %c0_11] : memref<1x8x256xf32, #tpu.memory_space<vmem>>, vector<1x8x256xf32>
      %19 = vector.shape_cast %18 : vector<1x8x256xf32> to vector<8x256xf32>
      %20 = vector.shape_cast %8 : vector<8x256xf32> to vector<1x8x256xf32>
      tpu.vector_store %arg6[%c0_9, %c0_10, %c0_11], %20 {strides = array<i32>} : memref<1x8x256xf32, #tpu.memory_space<vmem>>, vector<1x8x256xf32>,
    } else {
    }
    %c0_i32_5 = arith.constant 0 : i32
    %12 = arith.cmpi ne, %arg2, %c0_i32_5 : i32
    %13 = arith.extui %12 : i1 to i32
    %c0_i32_6 = arith.constant 0 : i32
    %14 = arith.cmpi ne, %13, %c0_i32_6 : i32
    scf.if %14 {
      %c0_9 = arith.constant 0 : index
      %c0_10 = arith.constant 0 : index
      %c0_11 = arith.constant 0 : index
      %18 = vector.load %arg6[%c0_9, %c0_10, %c0_11] : memref<1x8x256xf32, #tpu.memory_space<vmem>>, vector<1x8x256xf32>
      %19 = vector.shape_cast %18 : vector<1x8x256xf32> to vector<8x256xf32>
      %20 = arith.addf %19, %8 : vector<8x256xf32>
      %c0_12 = arith.constant 0 : index
      %c0_13 = arith.constant 0 : index
      %c0_14 = arith.constant 0 : index
      %21 = vector.load %arg6[%c0_12, %c0_13, %c0_14] : memref<1x8x256xf32, #tpu.memory_space<vmem>>, vector<1x8x256xf32>
      %22 = vector.shape_cast %21 : vector<1x8x256xf32> to vector<8x256xf32>
      %23 = vector.shape_cast %20 : vector<8x256xf32> to vector<1x8x256xf32>
      tpu.vector_store %arg6[%c0_12, %c0_13, %c0_14], %23 {strides = array<i32>} : memref<1x8x256xf32, #tpu.memory_space<vmem>>, vector<1x8x256xf32>,
    } else {
    }
    %c0_i32_7 = arith.constant 0 : i32
    %15 = arith.cmpi eq, %arg2, %c0_i32_7 : i32
    %16 = arith.extui %15 : i1 to i32
    %c0_i32_8 = arith.constant 0 : i32
    %17 = arith.cmpi ne, %16, %c0_i32_8 : i32
    scf.if %17 {
      %c0_9 = arith.constant 0 : index
      %c0_10 = arith.constant 0 : index
      %c0_11 = arith.constant 0 : index
      %18 = vector.load %arg6[%c0_9, %c0_10, %c0_11] : memref<1x8x256xf32, #tpu.memory_space<vmem>>, vector<1x8x256xf32>
      %19 = vector.shape_cast %18 : vector<1x8x256xf32> to vector<8x256xf32>
      %c0_12 = arith.constant 0 : index
      %c0_13 = arith.constant 0 : index
      %c0_14 = arith.constant 0 : index
      %20 = vector.load %arg5[%c0_12, %c0_13, %c0_14] : memref<1x1x256xf32, #tpu.memory_space<vmem>>, vector<1x1x256xf32>
      %21 = vector.shape_cast %20 : vector<1x1x256xf32> to vector<1x256xf32>
      %22 = vector.broadcast %21 : vector<1x256xf32> to vector<8x256xf32>
      %23 = arith.mulf %19, %22 : vector<8x256xf32>
      %c0_15 = arith.constant 0 : index
      %c0_16 = arith.constant 0 : index
      %c0_17 = arith.constant 0 : index
      %24 = vector.load %arg6[%c0_15, %c0_16, %c0_17] : memref<1x8x256xf32, #tpu.memory_space<vmem>>, vector<1x8x256xf32>
      %25 = vector.shape_cast %24 : vector<1x8x256xf32> to vector<8x256xf32>
      %26 = vector.shape_cast %23 : vector<8x256xf32> to vector<1x8x256xf32>
      tpu.vector_store %arg6[%c0_15, %c0_16, %c0_17], %26 {strides = array<i32>} : memref<1x8x256xf32, #tpu.memory_space<vmem>>, vector<1x8x256xf32>,
    } else {
    }
    return
  }
  func.func @transform_0(%arg0: i32, %arg1: i32, %arg2: i32) -> (i32, i32, i32) {
    %c0_i32 = arith.constant 0 : i32
    %c0_i32_0 = arith.constant 0 : i32
    %c0_i32_1 = arith.constant 0 : i32
    return %arg0, %c0_i32, %c0_i32_0 : i32, i32, i32
  }
  func.func @transform_1(%arg0: i32, %arg1: i32, %arg2: i32) -> (i32, i32, i32) {
    %c0_i32 = arith.constant 0 : i32
    return %arg0, %arg2, %arg1 : i32, i32, i32
  }
  func.func @transform_2(%arg0: i32, %arg1: i32, %arg2: i32) -> (i32, i32, i32) {
    %c0_i32 = arith.constant 0 : i32
    %c0_i32_0 = arith.constant 0 : i32
    return %arg0, %c0_i32, %arg1 : i32, i32, i32
  }
  func.func @transform_3(%arg0: i32, %arg1: i32, %arg2: i32) -> (i32, i32, i32) {
    %c0_i32 = arith.constant 0 : i32
    %c0_i32_0 = arith.constant 0 : i32
    return %arg0, %c0_i32, %arg1 : i32, i32, i32
  }
}

</mosaic_0001>

<bundles_post_ra>
// kernel: tpu_custom_call.1
= control target key start
LH: loop header
LB: loop body
LE: loop exit
PB: predicated region body
PF: predicated region fallthrough
CT: control target
= control target key end

     0   :  { %8 = vsyncpa [#allocation3], 0  ;;  %s1100_s0 = inlined_call_operand.hbm [shape: bf16[2,8,256], index: 0, kind: input, shape index: {}]   ;;  %s1101_s1 = inlined_call_operand.hbm [shape: s8[2,256,256], index: 1, kind: input, shape index: {}]   ;;  %s1102_s2 = inlined_call_operand.vmem [shape: f32[2,1,256], index: 2, kind: input, shape index: {}]   ;;  %s1103_s3 = inlined_call_operand.hbm [shape: f32[2,8,256], index: 3, kind: output, shape index: {}]  }
   0x1   :  { %10 = vsyncpa [#allocation3 + $0x1], 0 }
   0x2   :  { %11 = vsyncpa [#allocation6], 0 }
   0x3   :  { %13 = vsyncpa [#allocation6 + $0x1], 0 }
   0x4   :  { %14 = vsyncpa [#allocation4], 0 }
   0x5   :  { %16 = vsyncpa [#allocation4 + $0x1], 0  ;;  %s847_s12 = smov 0   ;;  %s849_s13 = smov 0  }
   0x6   :  { %s851_s14 = smov 0   ;;  %s853_s15 = smov 0  }
   0x7   :  { %s855_s16 = smov 0   ;;  %s857_s17 = smov 0  }
   0x8 LB: > { %s578_s18 = sadd.s32 4294967295, %s820_s17   ;;  %s579_s19 = sadd.s32 4294967294, %s820_s17   ;;  %s820_s17 = sphi %s857_s17, %s22_s17   ;;  %s816_s16 = sphi %s855_s16, %s1122_s16   ;;  %s812_s15 = sphi %s853_s15, %s1121_s15   ;;  %s808_s14 = sphi %s851_s14, %s1120_s14   ;;  %s804_s13 = sphi %s849_s13, %s1119_s13   ;;  %s800_s12 = sphi %s847_s12, %s1118_s12  }
   0x9   : > { %s41_s20 = sadd.s32 1, %s816_s16  ;;  %s48_s21 = sadd.s32 1, %s808_s14 }
   0xa   : > { %p43_p0 = scmp.ge.s32.totalorder %s41_s20, 2  ;;  %p55_p1 = scmp.ne.s32.totalorder %s808_s14, %s804_s13 }
   0xb   : > { %p56_p2 = scmp.eq.s32.totalorder %s820_s17, 0  ;;  %p61_p3 = scmp.ne.s32.totalorder %s804_s13, %s800_s12 }
   0xc   : > { %s1124_s20 = smov (%p43_p0, %s41_s20), 0  ;;  %p62_p5 = scmp.eq.s32.totalorder %s578_s18, 0 }
   0xd   : > { %p888_p4 = por %p56_p2, %p55_p1  ;;  %s45_s23 = ssub.s32 %s816_s16, %s1124_s20 }
   0xe   : > { %p145_p6 = scmp.eq.s32.totalorder %s578_s18, 1  ;;  %p46_p7 = scmp.eq.s32.totalorder %s45_s23, 0 }
   0xf   : > { %p894_p8 = por %p62_p5, %p61_p3  ;;  %p151_p10 = scmp.eq.s32.totalorder %s579_s19, 1 }
  0x10   : > { %p898_p9 = por %p145_p6, %p55_p1  ;;  %p620_p13 = scmp.lt.s32.totalorder %s820_s17, 2 }
  0x11   : > { %s1107_s24 = scalar_select %p894_p8, 1, 0 }
  0x12   : > { %s1108_s25 = scalar_select %p898_p9, 1, 0 }
  0x13   : > { %s903_s26 = scalar_select %p46_p7, %s808_s14, %s48_s21  }
  0x14   : > { %p905_p11 = por %p151_p10, %p61_p3  ;;  %s912_s28 = sand.u32 1, %s808_s14  }
  0x15   : > { %s582_s29 = sshll.u32 %s912_s28, 3  ;;  %s600_s30 = sshll.u32 %s816_s16, 7 }
  0x16   : > { %s1109_s27 = scalar_select %p905_p11, 1, 0 }
  0x17   : > { %s919_s6 = scalar_lea.hbm %s1100_s0, %s600_s30  ;;  %s175_s7 = scalar_lea.vmem [#allocation2], %s582_s29 }
  0x18   : > { %s183_s8 = sshll.u32 %s175_s7, 4  ;;  %p925_p0 = pnand %p620_p13, %p888_p4  ;;  %s921_s8 = int_to_ptr.vmem [resolvable:$true] %s183_s8 }
  0x19   : > { %s172_s10 = scalar_lea.sflag [#allocation3], %s912_s28  ;;  %s674_s11 = scalar_lea.hbm %s919_s6, 128 }
  0x1a   : > { %p675_p3 = scmp.ne.s32.totalorder %s919_s6, %s674_s11  ;;  %p676_p5 = pneg %p925_p0 }
  0x1b   : > { %s679_s21 = scalar_lea.hbm %s1100_s0, 256  ;;  %p680_p4 = scmp.lt.u32.totalorder %s919_s6, %s1100_s0 }
  0x1c   : > { %p677_p6 = pnand %p676_p5, %p675_p3  ;;  %p681_p10 = scmp.lt.u32.totalorder %s679_s21, %s674_s11 }
  0x1d   : > { %p683_p12 = scmp.lt.u32.totalorder %s674_s11, %s919_s6 }
  0x1e   : > { %p678_p7 = pneg %p677_p6  ;;  %p682_p13 = por %p681_p10, %p680_p4 }
  0x20   : > { %p684_p1 = por %p683_p12, %p682_p13 }
  0x22   : > { %p685_p2 = pnand %p684_p1, %p678_p7 }
  0x24   : > { %688 = shalt.err (!%p685_p2)
}
  0x25   : > { %s689_s29 = scalar_lea.vmem %s921_s8, 128  ;;  %s822_s30 = smov [#allocation2]  }
  0x26   : > { %p690_p3 = scmp.ne.s32.totalorder %s921_s8, %s689_s29  ;;  %s694_s4 = sshll.u32 %s822_s30, 4  ;;  %s695_s4 = int_to_ptr.vmem [resolvable:$false] %s694_s4 }
  0x27   : > { %s696_s5 = scalar_lea.vmem %s695_s4, 256  ;;  %p697_p9 = scmp.lt.s32.totalorder %s921_s8, %s695_s4 }
  0x28   : > { %p692_p6 = pnand %p690_p3, %p676_p5  ;;  %p698_p4 = scmp.lt.s32.totalorder %s696_s5, %s689_s29 }
  0x2a   : > { %p693_p11 = pneg %p692_p6  ;;  %p699_p10 = por %p698_p4, %p697_p9 }
  0x2c   : > { %p700_p12 = pnand %p699_p10, %p693_p11 }
  0x2e   : > { %703 = shalt.err (!%p700_p12)
}
  0x2f   : > { %612 = dma.hbm_to_vmem [thread:$0]  (!%p925_p0), %s919_s6, 128, %s921_s8, %s172_s10  }
  0x30   : > { %p1111_p1 = scmp.lt.s32.totalorder %s820_s17, 3  ;;  %p1112_p2 = scmp.ge.s32.totalorder %s820_s17, 1 }
  0x31   : > { %s585_s11 = sshll.u32 %s912_s28, 7  ;;  %s601_s18 = sshll.u32 %s816_s16, 11 }
  0x32   : > { %p961_p7 = pnand %p1112_p2, %p1111_p1  ;;  %s970_s22 = scalar_lea.hbm %s1101_s1, %s601_s18 }
  0x33   : > { %s194_s23 = scalar_lea.vmem [#allocation5], %s585_s11  ;;  %s191_s6 = scalar_lea.sflag [#allocation6], %s912_s28 }
  0x34   : > { %s206_s29 = sshll.u32 %s194_s23, 4  ;;  %s704_s8 = scalar_lea.hbm %s970_s22, 2048  ;;  %s972_s29 = int_to_ptr.vmem [resolvable:$true] %s206_s29 }
  0x35   : > { %p705_p9 = scmp.ne.s32.totalorder %s970_s22, %s704_s8  ;;  %s709_s4 = scalar_lea.hbm %s1101_s1, 4096 }
  0x36   : > { %p710_p3 = scmp.lt.u32.totalorder %s970_s22, %s1101_s1  ;;  %p711_p6 = scmp.lt.u32.totalorder %s709_s4, %s704_s8 }
  0x37   : > { %p707_p11 = pnand %p705_p9, %p676_p5  ;;  %p713_p10 = scmp.lt.u32.totalorder %s704_s8, %s970_s22 }
  0x38   : > { %p712_p4 = por %p711_p6, %p710_p3 }
  0x39   : > { %p708_p13 = pneg %p707_p11 }
  0x3a   : > { %p714_p12 = por %p713_p10, %p712_p4 }
  0x3c   : > { %p715_p1 = pnand %p714_p12, %p708_p13 }
  0x3e   : > { %718 = shalt.err (!%p715_p1)
}
  0x3f   : > { %s719_s11 = scalar_lea.vmem %s972_s29, 2048  ;;  %s823_s19 = smov [#allocation5]  }
  0x40   : > { %p720_p2 = scmp.ne.s32.totalorder %s972_s29, %s719_s11  ;;  %s724_s21 = sshll.u32 %s823_s19, 4  ;;  %s725_s21 = int_to_ptr.vmem [resolvable:$false] %s724_s21 }
  0x41   : > { %s726_s23 = scalar_lea.vmem %s725_s21, 4096  ;;  %p727_p8 = scmp.lt.s32.totalorder %s972_s29, %s725_s21 }
  0x42   : > { %p722_p9 = pnand %p720_p2, %p676_p5  ;;  %p728_p3 = scmp.lt.s32.totalorder %s726_s23, %s719_s11 }
  0x44   : > { %p723_p11 = pneg %p722_p9  ;;  %p729_p6 = por %p728_p3, %p727_p8 }
  0x46   : > { %p730_p4 = pnand %p729_p6, %p723_p11 }
  0x48   : > { %733 = shalt.err (!%p730_p4)
}
  0x49   : > { %s824_s8 = smov 256   ;;  %s825_s10 = smov 16  }
  0x4a   : > { %615 = dma.hbm_to_vmem [thread:$0]  (!%p925_p0), %s970_s22, 2048, %s972_s29, %s191_s6, %s824_s8, %s824_s8, %s825_s10  }
  0x4b   : > { %230 = sbr.rel (%p961_p7) target bundleno = 382 (0x17e), region = 32  ;;  %s1003_s30 = sand.u32 (!%p961_p7), 1, %s804_s13  }
  0x4c   : > { %s589_s4 = sshll.u32 (!%p961_p7), %s1003_s30, 3  ;;  %s233_s5 = scalar_lea.sflag (!%p961_p7), [#allocation3], %s1003_s30 }
  0x4d   : > { %s236_s18 = scalar_lea.vmem (!%p961_p7), [#allocation2], %s589_s4  ;;  %p1114_p8 = scmp.ne.s32.totalorder (!%p961_p7), %s1107_s24, 0 }
  0x52   : > { %787 = dma.done.wait (%p1114_p8), %s233_s5, 128  }
  0x53   : > { %789 = vsyncadd (%p1114_p8), %s233_s5, 4294967168  ;;  %s590_s28 = sshll.u32 %s1003_s30, 7  ;;  %s242_s9 = scalar_lea.sflag [#allocation6], %s1003_s30 }
  0x54   : > { %s1013_s7 = scalar_lea.vmem [#allocation5], %s590_s28 }
  0x55   : > { %791 = dma.done.wait (%p1114_p8), %s242_s9, 2048  }
  0x56   : > { %793 = vsyncadd (%p1114_p8), %s242_s9, 4294965248  ;;  %v300_v0 = vld [vmem:[%s1013_s7 + $0x8] sm:$0xff]  ;;  %v299_v1 = vld [vmem:[%s1013_s7] sm:$0xff]  ;;  %p284_p0 = scmp.lt.s32.totalorder %s812_s15, 1  ;;  %v418_v51 = vlaneseq  ;;  %s591_s19 = sshll.u32 %s1003_s30, 4 }
  0x57   : > { %v316_v2 = vunpack.c.l.s8.bf16 %v300_v0  ;;  %v318_v3 = vunpack.c.h.s8.bf16 %v300_v0  ;;  %v315_v4 = vunpack.c.l.s8.bf16 %v299_v1  ;;  %v302_v5 = vld [vmem:[%s1013_s7 + $0x18] sm:$0xff]  ;;  %v317_v6 = vunpack.c.h.s8.bf16 %v299_v1  ;;  %v301_v8 = vld [vmem:[%s1013_s7 + $0x10] sm:$0xff]  ;;  %v304_v13 = vld [vmem:[%s1013_s7 + $0x28] sm:$0xff]  ;;  %s602_s21 = sshll.u32 %s812_s15, 8  ;;  %s280_s23 = scalar_lea.vmem [#allocation7], %s591_s19 }
  0x58   : > { %v320_v7 = vunpack.c.l.s8.bf16 %v302_v5  ;;  %v1023_v9 = vld [vmem:[%s236_s18] sm:$0xff]  ;;  %v319_v10 = vunpack.c.l.s8.bf16 %v301_v8  ;;  %v322_v11 = vunpack.c.h.s8.bf16 %v302_v5  ;;  %v321_v14 = vunpack.c.h.s8.bf16 %v301_v8  ;;  %v303_v16 = vld [vmem:[%s1013_s7 + $0x20] sm:$0xff]  ;;  %v308_v25 = vld [vmem:[%s1013_s7 + $0x48] sm:$0xff]  ;;  %s285_s24 = scalar_select %p284_p0, %s812_s15, 1 }
  0x59   : > { %354 = vmatprep.subr.bf16.mxu0 %v316_v2  ;;  %v594_v12 = vcombine.high %v1023_v9, %v1023_v9  ;;  %v324_v15 = vunpack.c.l.s8.bf16 %v304_v13  ;;  %v323_v17 = vunpack.c.l.s8.bf16 %v303_v16  ;;  %v326_v18 = vunpack.c.h.s8.bf16 %v304_v13  ;;  %v306_v19 = vld [vmem:[%s1013_s7 + $0x38] sm:$0xff]  ;;  %v305_v22 = vld [vmem:[%s1013_s7 + $0x30] sm:$0xff]  ;;  %v307_v28 = vld [vmem:[%s1013_s7 + $0x40] sm:$0xff]  ;;  %s449_s8 = sshll.u32 %s280_s23, 4  ;;  %s1051_s5 = scalar_lea.hbm %s1103_s3, %s602_s21  ;;  %s1053_s8 = int_to_ptr.vmem [resolvable:$true] %s449_s8 }
  0x5a   : > { %355 = vmatpush1.bf16.msra.mxu0 %v315_v4  ;;  %v325_v20 = vunpack.c.h.s8.bf16 %v303_v16  ;;  %v328_v21 = vunpack.c.l.s8.bf16 %v306_v19  ;;  %v327_v23 = vunpack.c.l.s8.bf16 %v305_v22  ;;  %v330_v24 = vunpack.c.h.s8.bf16 %v306_v19  ;;  %v310_v31 = vld [vmem:[%s1013_s7 + $0x58] sm:$0xff]  ;;  %v309_v34 = vld [vmem:[%s1013_s7 + $0x50] sm:$0xff]  ;;  %v312_v37 = vld [vmem:[%s1013_s7 + $0x68] sm:$0xff]  ;;  %s592_s22 = sshll.u32 %s285_s24, 1  ;;  %s433_s15 = scalar_lea.sflag [#allocation4], %s1003_s30 }
  0x5b   : > { %356 = vmatprep.subr.bf16.mxu0 %v318_v3  ;;  %386 = vmatprep.mubr.bf16.mxu0 %v594_v12  ;;  %v329_v26 = vunpack.c.h.s8.bf16 %v305_v22  ;;  %v332_v27 = vunpack.c.l.s8.bf16 %v308_v25  ;;  %v331_v29 = vunpack.c.l.s8.bf16 %v307_v28  ;;  %v334_v30 = vunpack.c.h.s8.bf16 %v308_v25  ;;  %v311_v40 = vld [vmem:[%s1013_s7 + $0x60] sm:$0xff]  ;;  %v314_v43 = vld [vmem:[%s1013_s7 + $0x78] sm:$0xff]  ;;  %v313_v46 = vld [vmem:[%s1013_s7 + $0x70] sm:$0xff]  ;;  %s290_s11 = scalar_lea.vmem %s1102_s2, %s592_s22  ;;  %s734_s18 = scalar_lea.vmem %s1053_s8, 256 }
  0x5c   : > { %v333_v32 = vunpack.c.h.s8.bf16 %v307_v28  ;;  %v336_v33 = vunpack.c.l.s8.bf16 %v310_v31  ;;  %v335_v35 = vunpack.c.l.s8.bf16 %v309_v34  ;;  %v338_v36 = vunpack.c.h.s8.bf16 %v310_v31  ;;  %v416_v54 = vld [vmem:[%s290_s11] sm:$0x3]  ;;  %p735_p5 = scmp.ne.s32.totalorder %s1053_s8, %s734_s18  ;;  %p1115_p7 = scmp.ne.s32.totalorder %s1108_s25, 0 }
  0x5d   : > { %v337_v38 = vunpack.c.h.s8.bf16 %v309_v34  ;;  %v340_v39 = vunpack.c.l.s8.bf16 %v312_v37  ;;  %v339_v41 = vunpack.c.l.s8.bf16 %v311_v40  ;;  %v342_v42 = vunpack.c.h.s8.bf16 %v312_v37  ;;  %s826_s28 = smov [#allocation7]  }
  0x5e   : > { %357 = vmatpush1.bf16.msra.mxu0 %v317_v6  ;;  %v341_v44 = vunpack.c.h.s8.bf16 %v311_v40  ;;  %v344_v45 = vunpack.c.l.s8.bf16 %v314_v43  ;;  %v343_v47 = vunpack.c.l.s8.bf16 %v313_v46  ;;  %v346_v48 = vunpack.c.h.s8.bf16 %v314_v43  ;;  %p736_p13 = pnand %p735_p5, %p1115_p7  ;;  %s738_s9 = sshll.u32 %s826_s28, 4  ;;  %s739_s9 = int_to_ptr.vmem [resolvable:$false] %s738_s9 }
  0x5f   : > { %358 = vmatprep.subr.bf16.mxu0 %v320_v7  ;;  %v345_v49 = vunpack.c.h.s8.bf16 %v313_v46  ;;  %v593_v50 = vcombine.low %v1023_v9, %v1023_v9  ;;  %v419_v52 = vshrl.u32 %v418_v51, 7  ;;  %s740_s7 = scalar_lea.vmem %s739_s9, 512  ;;  %p741_p12 = scmp.lt.s32.totalorder %s1053_s8, %s739_s9 }
  0x60   : > { %p737_p10 = pneg %p736_p13  ;;  %p742_p1 = scmp.lt.s32.totalorder %s740_s7, %s734_s18 }
  0x61   : > { %v420_v53 = vsub.s32 0, %v419_v52  ;;  %v424_v55 = vsub.s32 1, %v419_v52 }
  0x62   : > { %359 = vmatpush1.bf16.msra.mxu0 %v319_v10  ;;  %p743_p2 = por %p742_p1, %p741_p12 }
  0x63   : > { %360 = vmatprep.subr.bf16.mxu0 %v322_v11  ;;  %v421_v56 = vrot.slane %v416_v54, %v420_v53  ;;  %v425_v57 = vrot.slane %v416_v54, %v424_v55 }
  0x64   : > { %p744_p9 = pnand %p743_p2, %p737_p10 }
  0x66   : > { %361 = vmatpush1.bf16.msra.mxu0 %v321_v14 }
  0x67   : > { %362 = vmatprep.subr.bf16.mxu0 %v324_v15 }
  0x6a   : > { %363 = vmatpush1.bf16.msra.mxu0 %v323_v17 }
  0x6b   : > { %364 = vmatprep.subr.bf16.mxu0 %v326_v18 }
  0x6e   : > { %365 = vmatpush1.bf16.msra.mxu0 %v325_v20 }
  0x6f   : > { %366 = vmatprep.subr.bf16.mxu0 %v328_v21 }
  0x72   : > { %367 = vmatpush1.bf16.msra.mxu0 %v327_v23 }
  0x73   : > { %368 = vmatprep.subr.bf16.mxu0 %v330_v24 }
  0x76   : > { %369 = vmatpush1.bf16.msra.mxu0 %v329_v26 }
  0x77   : > { %370 = vmatprep.subr.bf16.mxu0 %v332_v27 }
  0x7a   : > { %371 = vmatpush1.bf16.msra.mxu0 %v331_v29 }
  0x7b   : > { %372 = vmatprep.subr.bf16.mxu0 %v334_v30 }
  0x7e   : > { %373 = vmatpush1.bf16.msra.mxu0 %v333_v32 }
  0x7f   : > { %374 = vmatprep.subr.bf16.mxu0 %v336_v33 }
  0x82   : > { %375 = vmatpush1.bf16.msra.mxu0 %v335_v35 }
  0x83   : > { %376 = vmatprep.subr.bf16.mxu0 %v338_v36 }
  0x86   : > { %377 = vmatpush1.bf16.msra.mxu0 %v337_v38 }
  0x87   : > { %378 = vmatprep.subr.bf16.mxu0 %v340_v39 }
  0x8a   : > { %379 = vmatpush1.bf16.msra.mxu0 %v339_v41 }
  0x8b   : > { %380 = vmatprep.subr.bf16.mxu0 %v342_v42 }
  0x8e   : > { %381 = vmatpush1.bf16.msra.mxu0 %v341_v44 }
  0x8f   : > { %382 = vmatprep.subr.bf16.mxu0 %v344_v45 }
  0x92   : > { %383 = vmatpush1.bf16.msra.mxu0 %v343_v47 }
  0x93   : > { %384 = vmatprep.subr.bf16.mxu0 %v346_v48 }
  0x96   : > { %385 = vmatpush1.bf16.msra.mxu0 %v345_v49 }
  0x99   : > { %387 = vmatmul.mubr.bf16.vlgmr.msra.gmra.mrb[0].mxu0 %v593_v50 }
 0x16c   : > { %v388_v58 = vpop.f32.mrb[0].mxu0 }
 0x16d   : > { %v428_v59 = vmul.f32 %v421_v56, %v388_v58  ;;  %v390_v60 = vpop.f32.mrb[1].mxu0 }
 0x16e   : > { %v429_v61 = vmul.f32 %v425_v57, %v390_v60  ;;  %v392_v62 = vpop.f32.mrb[2].mxu0 }
 0x16f   : > { %430 = vst [vmem:[%s280_s23] sm:$0xff] %v428_v59  ;;  %v393_v63 = vpop.f32.mrb[3].mxu0 }
 0x170   : > { %431 = vst [vmem:[%s280_s23 + $0x8] sm:$0xff] %v429_v61 }
 0x171   : > { %747 = shalt.err (!%p744_p9)
}
 0x172   : > { %s748_s30 = scalar_lea.hbm %s1051_s5, 256  ;;  %s752_s29 = scalar_lea.hbm %s1103_s3, 512 }
 0x173   : > { %p749_p11 = scmp.ne.s32.totalorder %s1051_s5, %s748_s30  ;;  %p753_p4 = scmp.lt.u32.totalorder %s1051_s5, %s1103_s3 }
 0x174   : > { %p754_p8 = scmp.lt.u32.totalorder %s752_s29, %s748_s30  ;;  %p756_p5 = scmp.lt.u32.totalorder %s748_s30, %s1051_s5 }
 0x175   : > { %p750_p3 = pnand %p749_p11, %p1115_p7 }
 0x176   : > { %p755_p0 = por %p754_p8, %p753_p4 }
 0x177   : > { %p751_p6 = pneg %p750_p3 }
 0x178   : > { %p757_p13 = por %p756_p5, %p755_p0 }
 0x17a   : > { %p758_p10 = pnand %p757_p13, %p751_p6 }
 0x17c   : > { %761 = shalt.err (!%p758_p10)
}
 0x17d   : > { %607 = dma.vmem_to_hbm [thread:$0]  (%p1115_p7), %s1053_s8, 256, %s1051_s5, %s433_s15  }
 0x17e PF: > { %s461_s19 = sand.u32 1, %s800_s12   ;;  %p1116_p12 = scmp.ne.s32.totalorder %s1109_s27, 0 }
 0x17f   : > { %p1117_p1 = scmp.ge.s32.totalorder %s820_s17, 2  ;;  %s462_s21 = scalar_lea.sflag [#allocation4], %s461_s19 }
 0x181   : > { %p617_p2 = pnand %p1117_p1, %p1116_p12 }
 0x183   : > { %795 = dma.done.wait (!%p617_p2), %s462_s21, 256  }
 0x184   : > { %797 = vsyncadd (!%p617_p2), %s462_s21, 4294967040  ;;  %s22_s17 = sadd.s32 1, %s820_s17   ;;  %s1118_s12 = smov %s804_s13 }
 0x185   : > { %p19_p9 = scmp.ge.s32.totalorder %s22_s17, 4   ;;  %s1119_s13 = smov %s808_s14 }
 0x186   : > { %s1120_s14 = smov %s903_s26  ;;  %s1121_s15 = smov %s816_s16 }
 0x187   : > { %s1122_s16 = smov %s1124_s20  ;;  %21 = sbr.rel (!%p19_p9) target bundleno = 8 (0x8), region = 106 }
 0x18e   :  { %467 = vsyncpa [#allocation3], 1 }
 0x18f   :  { %469 = vsyncpa [#allocation3 + $0x1], 1 }
 0x190   :  { %470 = vsyncpa [#allocation6], 1 }
 0x191   :  { %472 = vsyncpa [#allocation6 + $0x1], 1 }
 0x192   :  { %473 = vsyncpa [#allocation4], 1 }
 0x193   :  { %475 = vsyncpa [#allocation4 + $0x1], 1 }

</bundles_post_ra>
